<compile_context>
chip_gen: v6e
topology: v6e:2x2x1
jax: 0.10.0
libtpu: 0.0.40
codegen_flags: <defaults>
</compile_context>

<pallas_src>
import math

import jax
import jax.numpy as jnp
from jax.experimental import pallas as pl
from jax.experimental.pallas import tpu as pltpu


def _mlp_kernel(x_ref, w1_ref, b1_ref, w2_ref, b2_ref, o_ref):
    # x_ref: (TM, D_in), w1_ref: (D_in, H), b1_ref: (1, H)
    # w2_ref: (H, D_out), b2_ref: (1, D_out), o_ref: (TM, D_out)

    # fc1: feed the MXU its native operand dtype (bf16 runs at full rate),
    # accumulate in f32.
    h = jnp.dot(x_ref[...], w1_ref[...], preferred_element_type=jnp.float32)
    h = h + b1_ref[...].astype(jnp.float32)

    # exact (erf-based) GELU, matching torch.nn.GELU default numerics.
    h = 0.5 * h * (1.0 + jax.lax.erf(h * (1.0 / math.sqrt(2.0))))

    # dropout with p=0.0 is the identity; nothing to do here.
    # TODO(synk): if drop > 0 were needed, use pltpu.prng_seed / prng_random_bits.

    # fc2: cast the f32 intermediate back to the weight dtype so this matmul
    # also runs at native MXU rate (no-op when everything is f32).
    h = h.astype(w2_ref.dtype)
    y = jnp.dot(h, w2_ref[...], preferred_element_type=jnp.float32)
    y = y + b2_ref[...].astype(jnp.float32)

    o_ref[...] = y.astype(o_ref.dtype)


def _choose_tile_m(m, d_in, hidden, d_out, x_bytes, w_bytes,
                   max_tile=512, vmem_budget=36 * 1024 * 1024):
    """Pick the largest legal row tile whose working set fits a conservative
    VMEM budget (keeps the same config valid on v5e/v6e 128 MiB and v7x 64 MiB).
    """
    # Weights/biases are resident and double-buffered by the Pallas pipeline.
    fixed = 2 * w_bytes * (d_in * hidden + hidden + hidden * d_out + d_out)
    # Per-row cost: double-buffered x and out tiles + f32 intermediates h, y.
    per_row = 2 * x_bytes * (d_in + d_out) + 4 * (hidden + d_out)

    candidates = [t for t in (512, 256, 128, 64, 32, 16, 8)
                  if t <= max_tile and t < m]
    if m <= max_tile:
        # One block covering all rows (block dim == full array dim is always
        # legal, even when m is not a multiple of 8).
        candidates.insert(0, m)
    for tile in candidates:
        if fixed + tile * per_row <= vmem_budget:
            return tile
    return candidates[-1] if candidates else m


def mlp_pallas(x, w1, b1, w2, b2, *, tile_m=512):
    """x: (..., in_features). w1: (in, hidden), b1: (hidden,),
    w2: (hidden, out), b2: (out,). Returns (..., out)."""
    in_features = x.shape[-1]
    hidden = w1.shape[1]
    out_features = w2.shape[1]

    lead_shape = x.shape[:-1]
    m = math.prod(lead_shape) if lead_shape else 1
    x2 = x.reshape(m, in_features)

    tm = _choose_tile_m(m, in_features, hidden, out_features,
                        jnp.dtype(x.dtype).itemsize,
                        jnp.dtype(w1.dtype).itemsize,
                        max_tile=tile_m)
    grid = (pl.cdiv(m, tm),)

    b1_2d = b1.reshape(1, hidden)
    b2_2d = b2.reshape(1, out_features)

    # TODO(synk): if out_features < 128 in a real deployment, pack the output
    # lane dim to a multiple of 128 (avoids masked vst.msk partial stores); the
    # demo dims are tiny so it is left as-is here.
    # TODO(synk): for very large hidden (e.g. >= 8K) add a hidden-chunk grid
    # axis with a VMEM f32 accumulator instead of materializing (tm, hidden).

    out = pl.pallas_call(
        _mlp_kernel,
        out_shape=jax.ShapeDtypeStruct((m, out_features), x.dtype),
        grid_spec=pltpu.PrefetchScalarGridSpec(
            num_scalar_prefetch=0,
            grid=grid,
            in_specs=[
                pl.BlockSpec((tm, in_features), lambda i: (i, 0)),
                pl.BlockSpec((in_features, hidden), lambda i: (0, 0)),
                pl.BlockSpec((1, hidden), lambda i: (0, 0)),
                pl.BlockSpec((hidden, out_features), lambda i: (0, 0)),
                pl.BlockSpec((1, out_features), lambda i: (0, 0)),
            ],
            out_specs=pl.BlockSpec((tm, out_features), lambda i: (i, 0)),
        ),
        compiler_params=pltpu.CompilerParams(
            dimension_semantics=("parallel",),
            vmem_limit_bytes=48 * 1024 * 1024,
        ),
    )(x2, w1, b1_2d, w2, b2_2d)

    return out.reshape(*lead_shape, out_features)


def init_mlp_params(key, in_features, hidden_features, out_features,
                    dtype=jnp.float32):
    """Deterministic init mimicking nn.Linear's kaiming-uniform defaults."""
    k1, k2, k3, k4 = jax.random.split(key, 4)
    bound1 = 1.0 / math.sqrt(in_features)
    bound2 = 1.0 / math.sqrt(hidden_features)
    # stored already transposed relative to torch (in, out) so kernel does x @ W
    w1 = jax.random.uniform(k1, (in_features, hidden_features),
                            minval=-bound1, maxval=bound1, dtype=dtype)
    b1 = jax.random.uniform(k2, (hidden_features,),
                            minval=-bound1, maxval=bound1, dtype=dtype)
    w2 = jax.random.uniform(k3, (hidden_features, out_features),
                            minval=-bound2, maxval=bound2, dtype=dtype)
    b2 = jax.random.uniform(k4, (out_features,),
                            minval=-bound2, maxval=bound2, dtype=dtype)
    return w1, b1, w2, b2


def mlp_reference(x, w1, b1, w2, b2):
    h = x @ w1 + b1
    h = jax.nn.gelu(h, approximate=False)
    return h @ w2 + b2


if __name__ == "__main__":
    key = jax.random.PRNGKey(0)
    kx, kp = jax.random.split(key)

    batch, seq, in_features = 2, 8, 32
    hidden_features = 64
    out_features = 32  # out_features defaults to in_features in the module

    x = jax.random.normal(kx, (batch, seq, in_features), dtype=jnp.float32)
    w1, b1, w2, b2 = init_mlp_params(kp, in_features, hidden_features,
                                     out_features)

    y = mlp_pallas(x, w1, b1, w2, b2)
    y = jax.block_until_ready(y)

    y_ref = mlp_reference(x, w1, b1, w2, b2)
    assert y.shape == (batch, seq, out_features)
    assert jnp.allclose(y, y_ref, atol=1e-5, rtol=1e-5), "mismatch vs reference"

    print("KERNEL_OK")
</pallas_src>

<mosaic_0001>
module attributes {stable_mosaic.version = 11 : i64} {
  func.func @_mlp_kernel(%arg0: i32, %arg1: memref<16x32xf32, #tpu.memory_space<vmem>>, %arg2: memref<32x64xf32, #tpu.memory_space<vmem>>, %arg3: memref<1x64xf32, #tpu.memory_space<vmem>>, %arg4: memref<64x32xf32, #tpu.memory_space<vmem>>, %arg5: memref<1x32xf32, #tpu.memory_space<vmem>>, %arg6: memref<16x32xf32, #tpu.memory_space<vmem>>) attributes {dimension_semantics = [#tpu.dimension_semantics<parallel>], iteration_bounds = array<i64: 1>, scalar_prefetch = 0 : i64, scratch_operands = 0 : i64, tpu.core_type = #tpu.core_type<tc>, window_params = [{transform_indices = @transform_0, window_bounds = array<i64: 16, 32>}, {pipeline_mode = #tpu.pipeline_mode<synchronous>, transform_indices = @transform_1, window_bounds = array<i64: 32, 64>}, {pipeline_mode = #tpu.pipeline_mode<synchronous>, transform_indices = @transform_2, window_bounds = array<i64: 1, 64>}, {pipeline_mode = #tpu.pipeline_mode<synchronous>, transform_indices = @transform_3, window_bounds = array<i64: 64, 32>}, {pipeline_mode = #tpu.pipeline_mode<synchronous>, transform_indices = @transform_4, window_bounds = array<i64: 1, 32>}, {transform_indices = @transform_5, window_bounds = array<i64: 16, 32>}]} {
    %c0 = arith.constant 0 : index
    %c0_0 = arith.constant 0 : index
    %0 = vector.load %arg1[%c0, %c0_0] : memref<16x32xf32, #tpu.memory_space<vmem>>, vector<16x32xf32>
    %c0_1 = arith.constant 0 : index
    %c0_2 = arith.constant 0 : index
    %1 = vector.load %arg2[%c0_1, %c0_2] : memref<32x64xf32, #tpu.memory_space<vmem>>, vector<32x64xf32>
    %cst = arith.constant dense<0.000000e+00> : vector<16x64xf32>
    %2 = tpu.matmul %0, %1, %cst {dimension_numbers = #tpu.dot_dimension_numbers<[1], [0], [0], [1], [0, 0, 1, 1], [], []>} : vector<16x32xf32>, vector<32x64xf32>, vector<16x64xf32> -> vector<16x64xf32>
    %c0_3 = arith.constant 0 : index
    %c0_4 = arith.constant 0 : index
    %3 = vector.load %arg3[%c0_3, %c0_4] : memref<1x64xf32, #tpu.memory_space<vmem>>, vector<1x64xf32>
    %4 = vector.broadcast %3 : vector<1x64xf32> to vector<16x64xf32>
    %5 = arith.addf %2, %4 : vector<16x64xf32>
    %cst_5 = arith.constant 5.000000e-01 : f32
    %6 = vector.broadcast %cst_5 : f32 to vector<16x64xf32>
    %7 = arith.mulf %6, %5 : vector<16x64xf32>
    %cst_6 = arith.constant 0.707106769 : f32
    %8 = vector.broadcast %cst_6 : f32 to vector<16x64xf32>
    %9 = arith.mulf %5, %8 : vector<16x64xf32>
    %10 = math.erf %9 : vector<16x64xf32>
    %cst_7 = arith.constant 1.000000e+00 : f32
    %11 = vector.broadcast %cst_7 : f32 to vector<16x64xf32>
    %12 = arith.addf %11, %10 : vector<16x64xf32>
    %13 = arith.mulf %7, %12 : vector<16x64xf32>
    %c0_8 = arith.constant 0 : index
    %c0_9 = arith.constant 0 : index
    %14 = vector.load %arg4[%c0_8, %c0_9] : memref<64x32xf32, #tpu.memory_space<vmem>>, vector<64x32xf32>
    %cst_10 = arith.constant dense<0.000000e+00> : vector<16x32xf32>
    %15 = tpu.matmul %13, %14, %cst_10 {dimension_numbers = #tpu.dot_dimension_numbers<[1], [0], [0], [1], [0, 0, 1, 1], [], []>} : vector<16x64xf32>, vector<64x32xf32>, vector<16x32xf32> -> vector<16x32xf32>
    %c0_11 = arith.constant 0 : index
    %c0_12 = arith.constant 0 : index
    %16 = vector.load %arg5[%c0_11, %c0_12] : memref<1x32xf32, #tpu.memory_space<vmem>>, vector<1x32xf32>
    %17 = vector.broadcast %16 : vector<1x32xf32> to vector<16x32xf32>
    %18 = arith.addf %15, %17 : vector<16x32xf32>
    %c0_13 = arith.constant 0 : index
    %c0_14 = arith.constant 0 : index
    %19 = vector.load %arg6[%c0_13, %c0_14] : memref<16x32xf32, #tpu.memory_space<vmem>>, vector<16x32xf32>
    tpu.vector_store %arg6[%c0_13, %c0_14], %18 {strides = array<i32>} : memref<16x32xf32, #tpu.memory_space<vmem>>, vector<16x32xf32>,
    return
  }
  func.func @transform_0(%arg0: i32) -> (i32, i32) {
    %c0_i32 = arith.constant 0 : i32
    %c0_i32_0 = arith.constant 0 : i32
    return %arg0, %c0_i32 : i32, i32
  }
  func.func @transform_1(%arg0: i32) -> (i32, i32) {
    %c0_i32 = arith.constant 0 : i32
    %c0_i32_0 = arith.constant 0 : i32
    %c0_i32_1 = arith.constant 0 : i32
    return %c0_i32, %c0_i32_0 : i32, i32
  }
  func.func @transform_2(%arg0: i32) -> (i32, i32) {
    %c0_i32 = arith.constant 0 : i32
    %c0_i32_0 = arith.constant 0 : i32
    %c0_i32_1 = arith.constant 0 : i32
    return %c0_i32, %c0_i32_0 : i32, i32
  }
  func.func @transform_3(%arg0: i32) -> (i32, i32) {
    %c0_i32 = arith.constant 0 : i32
    %c0_i32_0 = arith.constant 0 : i32
    %c0_i32_1 = arith.constant 0 : i32
    return %c0_i32, %c0_i32_0 : i32, i32
  }
  func.func @transform_4(%arg0: i32) -> (i32, i32) {
    %c0_i32 = arith.constant 0 : i32
    %c0_i32_0 = arith.constant 0 : i32
    %c0_i32_1 = arith.constant 0 : i32
    return %c0_i32, %c0_i32_0 : i32, i32
  }
  func.func @transform_5(%arg0: i32) -> (i32, i32) {
    %c0_i32 = arith.constant 0 : i32
    %c0_i32_0 = arith.constant 0 : i32
    return %arg0, %c0_i32 : i32, i32
  }
}

</mosaic_0001>

<bundles_post_ra>
// kernel: tpu_custom_call.1
= control target key start
LH: loop header
LB: loop body
LE: loop exit
PB: predicated region body
PF: predicated region fallthrough
CT: control target
= control target key end

     0   :  { %vm34_vm0 = vcmask 261120   ;;  %s410_s0 = inlined_call_operand.vmem [shape: f32[16,32], index: 0, kind: input, shape index: {}]   ;;  %s411_s1 = inlined_call_operand.vmem [shape: f32[32,64], index: 1, kind: input, shape index: {}]   ;;  %s412_s2 = inlined_call_operand.vmem [shape: f32[1,64], index: 2, kind: input, shape index: {}]   ;;  %s413_s3 = inlined_call_operand.vmem [shape: f32[64,32], index: 3, kind: input, shape index: {}]   ;;  %s414_s4 = inlined_call_operand.vmem [shape: f32[1,32], index: 4, kind: input, shape index: {}]   ;;  %s415_s5 = inlined_call_operand.hbm [shape: f32[16,32], index: 5, kind: output, shape index: {}]  }
   0x1   :  { %v26_v0 = vld [vmem:[%s411_s1 + $0x18] sm:$0xff]  ;;  %v25_v1 = vld [vmem:[%s411_s1 + $0x10] sm:$0xff]  ;;  %v21_v2 = vld [vmem:[%s410_s0] sm:$0xff] }
   0x2   :  { %263 = vmatprep.subr.mxu0 %v26_v0  ;;  %v24_v3 = vld [vmem:[%s411_s1 + $0x8] sm:$0xff]  ;;  %271 = vmatprep.mubr.msk.f32.mxu0 %vm34_vm0, %v21_v2 }
   0x3   :  { %264 = vmatpush3.msra.mxu0 %v26_v0 }
   0x4   :  { %10 = vsyncpa [#allocation3], 0  ;;  %265 = vmatprep.subr.mxu0 %v25_v1  ;;  %v23_v4 = vld [vmem:[%s411_s1] sm:$0xff]  ;;  %v22_v5 = vld [vmem:[%s410_s0 + $0x8] sm:$0xff]  ;;  %vm141_vm1 = vcmask 523264   ;;  %s322_s21 = smov [#allocation2]  }
   0x5   :  { %266 = vmatpush3.msra.mxu0 %v25_v1  ;;  %v133_v6 = vld [vmem:[%s413_s3 + $0x38] sm:$0xff]  ;;  %v132_v7 = vld [vmem:[%s413_s3 + $0x30] sm:$0xff]  ;;  %v131_v8 = vld [vmem:[%s413_s3 + $0x28] sm:$0xff]  ;;  %s230_s22 = sshll.u32 %s322_s21, 4  ;;  %s231_s22 = int_to_ptr.vmem [resolvable:$true] %s230_s22 }
   0x6   :  { %267 = vmatprep.subr.mxu0 %v24_v3  ;;  %274 = vmatprep.subr.mxu1 %v133_v6  ;;  %v130_v9 = vld [vmem:[%s413_s3 + $0x20] sm:$0xff]  ;;  %v129_v10 = vld [vmem:[%s413_s3 + $0x18] sm:$0xff]  ;;  %v128_v11 = vld [vmem:[%s413_s3 + $0x10] sm:$0xff]  ;;  %s300_s23 = scalar_lea.vmem %s231_s22, 256  ;;  %p305_p1 = scmp.lt.s32.totalorder %s231_s22, %s231_s22 }
   0x7   :  { %268 = vmatpush3.msra.mxu0 %v24_v3  ;;  %275 = vmatpush3.msra.mxu1 %v133_v6  ;;  %v127_v12 = vld [vmem:[%s413_s3 + $0x8] sm:$0xff]  ;;  %v126_v13 = vld [vmem:[%s413_s3] sm:$0xff]  ;;  %p301_p0 = scmp.ne.s32.totalorder %s231_s22, %s300_s23  ;;  %p306_p2 = scmp.lt.s32.totalorder %s300_s23, %s300_s23 }
   0x8   :  { %269 = vmatprep.subr.mxu0 %v23_v4  ;;  %276 = vmatprep.subr.mxu1 %v132_v7  ;;  %v241_v14 = vld [vmem:[%s412_s2] ss:$0 sm:$0xff] }
   0x9   :  { %270 = vmatpush3.msra.mxu0 %v23_v4  ;;  %277 = vmatpush3.msra.mxu1 %v132_v7  ;;  %v244_v29 = vld [vmem:[%s414_s4] ss:$0 sm:$0xff]  ;;  %p307_p3 = por %p306_p2, %p305_p1 }
   0xa   :  { %272 = vmatmul.mubr.msk.f32.vlgmr.msra.gmra.mxu0 %vm34_vm0, %v22_v5  ;;  %278 = vmatprep.subr.mxu1 %v131_v8 }
   0xb   :  { %279 = vmatpush3.msra.mxu1 %v131_v8  ;;  %p308_p4 = pnand %p307_p3, %p301_p0 }
   0xc   :  { %280 = vmatprep.subr.mxu1 %v130_v9 }
   0xd   :  { %281 = vmatpush3.msra.mxu1 %v130_v9 }
   0xe   :  { %282 = vmatprep.subr.mxu1 %v129_v10 }
   0xf   :  { %283 = vmatpush3.msra.mxu1 %v129_v10 }
  0x10   :  { %284 = vmatprep.subr.mxu1 %v128_v11 }
  0x11   :  { %285 = vmatpush3.msra.mxu1 %v128_v11 }
  0x12   :  { %286 = vmatprep.subr.mxu1 %v127_v12 }
  0x13   :  { %287 = vmatpush3.msra.mxu1 %v127_v12 }
  0x14   :  { %288 = vmatprep.subr.mxu1 %v126_v13 }
  0x15   :  { %289 = vmatpush3.msra.mxu1 %v126_v13 }
  0xca   :  { %v273_v15 = vpop.f32.mrf.mxu0 }
  0xcb   :  { %v113_v16 = vadd.f32 %v273_v15, %v241_v14 }
  0xcc   :  { %v107_v17 = vpop.f32.mrf.mxu0 }
  0xcd   :  { %v119_v18 = vmul.f32 0.70710677, %v113_v16  ;;  %v108_v19 = vadd.f32 %v241_v14, %v107_v17  ;;  %v117_v26 = vmul.f32 0.5, %v113_v16 }
  0xcf   :  { %296 = verf.f32 %v119_v18  ;;  %v118_v20 = vmul.f32 0.70710677, %v108_v19  ;;  %v116_v24 = vmul.f32 0.5, %v108_v19 }
  0xd1   :  { %298 = verf.f32 %v118_v20 }
  0xdc   :  { %v297_v21 = vpop.eup %296 }
  0xdd   :  { %v123_v23 = vadd.f32 1.0, %v297_v21 }
  0xde   :  { %v299_v22 = vpop.eup %298 }
  0xdf   :  { %v122_v25 = vadd.f32 1.0, %v299_v22  ;;  %v125_v28 = vmul.f32 %v123_v23, %v117_v26 }
  0xe1   :  { %v124_v27 = vmul.f32 %v122_v25, %v116_v24 }
  0xe3   :  { %290 = vmatprep.mubr.msk.f32.mxu1 %vm141_vm1, %v124_v27 }
  0xe4   :  { %291 = vmatmul.mubr.msk.f32.vlgmr.msra.gmra.mxu1 %vm141_vm1, %v125_v28 }
 0x1a4   :  { %v292_v30 = vpop.f32.mrf.mxu1 }
 0x1a5   :  { %v220_v31 = vadd.f32 %v292_v30, %v244_v29 }
 0x1a6   :  { %v214_v32 = vpop.f32.mrf.mxu1 }
 0x1a7   :  { %224 = vst.msk [vmem:[#allocation2 + $0x8] sm:$0xff] %vm34_vm0, %v220_v31  ;;  %v215_v33 = vadd.f32 %v244_v29, %v214_v32 }
 0x1a9   :  { %223 = vst.msk [vmem:[#allocation2] sm:$0xff] %vm34_vm0, %v215_v33 }
 0x1aa   :  { %311 = shalt.err (!%p308_p4)
}
 0x1ab   :  { %s323_s24 = smov 128   ;;  %s324_s4 = smov 8  }
 0x1ac   :  { %236 = dma.vmem_to_hbm [thread:$0]  %s231_s22, 256, %s415_s5, [#allocation3], %s323_s24, %s323_s24, %s324_s4  }
 0x1ad   :  { %320 = dma.done.wait [#allocation3], 256  }
 0x1ae   :  { %321 = vsyncadd [#allocation3], 4294967040 }
 0x1af   :  { %240 = vsyncpa [#allocation3], 1 }

</bundles_post_ra>
